<compile_context>
chip_gen: v7x
topology: tpu7x:2x2x1
jax: 0.10.0
libtpu: 0.0.40
codegen_flags: <defaults>
</compile_context>

<pallas_src>
import numpy as np
import jax
import jax.numpy as jnp
from jax.experimental import pallas as pl
from jax.experimental.pallas import tpu as pltpu


def _round_up(x, m):
    return ((x + m - 1) // m) * m


def _pad2(x, rows, cols):
    pr, pc = rows - x.shape[0], cols - x.shape[1]
    if pr or pc:
        x = jnp.pad(x, ((0, pr), (0, pc)))
    return x


def _vmem_budget():
    """~75% of physical per-TensorCore VMEM (v5e/v6e: 128 MiB -> ~96 MiB,
    v7x: 64 MiB -> ~48 MiB).  Never hand the compiler the full physical VMEM."""
    cap = 64 * 1024 * 1024  # conservative default (v7x-sized)
    try:
        cap = int(pltpu.get_tpu_info().vmem_capacity_bytes)
    except Exception:
        pass
    return (cap * 3) // 4


def _resident_spec(shape, index_map):
    """BlockSpec for a grid-invariant (resident) operand: single-buffer it when the
    installed JAX supports pipeline_mode (frees the redundant second VMEM buffer;
    matters most on v7x's 64 MiB VMEM)."""
    try:
        return pl.BlockSpec(shape, index_map, pipeline_mode=pl.Buffered(1))
    except (TypeError, AttributeError):
        return pl.BlockSpec(shape, index_map)


# --------------------------------------------------------------------------- kernels


def _sage_kernel_post(adj_ref, xsrc_ref, xdst_ref, invdeg_ref, wn_ref, ws_ref,
                      out_ref, acc_ref):
    """acc += adj01_tile @ xsrc_tile over k; finalize with
    out = (acc * 1/deg) @ w_neigh + xdst @ w_self.   (used when d_out >= d_in)"""
    k = pl.program_id(1)

    @pl.when(k == 0)
    def _init():
        acc_ref[...] = jnp.zeros_like(acc_ref)

    acc_ref[...] += jnp.dot(adj_ref[...], xsrc_ref[...],
                            preferred_element_type=jnp.float32)

    @pl.when(k == pl.num_programs(1) - 1)
    def _finalize():
        h_neigh = (acc_ref[...] * invdeg_ref[...]).astype(wn_ref.dtype)
        out_ref[...] = (
            jnp.dot(h_neigh, wn_ref[...], preferred_element_type=jnp.float32)
            + jnp.dot(xdst_ref[...], ws_ref[...], preferred_element_type=jnp.float32)
        ).astype(out_ref.dtype)


def _sage_kernel_pre(adj_ref, psrc_ref, xdst_ref, invdeg_ref, ws_ref,
                     out_ref, acc_ref):
    """Re-associated form for d_out < d_in: psrc = feat_src @ w_neigh is
    precomputed, so acc += adj01_tile @ psrc_tile accumulates d_out lanes only."""
    k = pl.program_id(1)

    @pl.when(k == 0)
    def _init():
        acc_ref[...] = jnp.zeros_like(acc_ref)

    acc_ref[...] += jnp.dot(adj_ref[...], psrc_ref[...],
                            preferred_element_type=jnp.float32)

    @pl.when(k == pl.num_programs(1) - 1)
    def _finalize():
        out_ref[...] = (
            acc_ref[...] * invdeg_ref[...]
            + jnp.dot(xdst_ref[...], ws_ref[...], preferred_element_type=jnp.float32)
        ).astype(out_ref.dtype)


def _proj_kernel(x_ref, w_ref, o_ref):
    o_ref[...] = jnp.dot(x_ref[...], w_ref[...],
                         preferred_element_type=jnp.float32).astype(o_ref.dtype)


def _project_src(xsrc_p, wn_p, tr, budget):
    """psrc = feat_src @ w_neigh as a small row-tiled Pallas matmul."""
    n_src_p, d_in_p = xsrc_p.shape
    d_out_p = wn_p.shape[1]
    it = xsrc_p.dtype.itemsize

    def fp(tr_):
        return (tr_ * d_in_p * it * 2 + d_in_p * d_out_p * it * 2
                + tr_ * d_out_p * it * 2)

    while fp(tr) > budget and tr > 64:
        tr //= 2
    limit = int(min(budget, max(32 * 1024 * 1024, fp(tr) + 8 * 1024 * 1024)))

    return pl.pallas_call(
        _proj_kernel,
        out_shape=jax.ShapeDtypeStruct((n_src_p, d_out_p), xsrc_p.dtype),
        grid_spec=pltpu.PrefetchScalarGridSpec(
            num_scalar_prefetch=0,
            grid=(n_src_p // tr,),
            in_specs=[pl.BlockSpec((tr, d_in_p), lambda i: (i, 0)),
                      _resident_spec((d_in_p, d_out_p), lambda i: (0, 0))],
            out_specs=pl.BlockSpec((tr, d_out_p), lambda i: (i, 0)),
        ),
        compiler_params=pltpu.CompilerParams(
            dimension_semantics=("parallel",),
            vmem_limit_bytes=limit,
        ),
    )(xsrc_p, wn_p)


# --------------------------------------------------------------------------- wrapper


def sage_conv_mean(adj, deg, feat_src, feat_dst, w_neigh, w_self, *,
                   tm=512, tk=2048, compute_dtype=jnp.bfloat16,
                   out_dtype=jnp.float32):
    """rst = fc_neigh(mean_agg(feat_src)) + fc_self(feat_dst), fused on TPU.

    adj      : (N_dst, N_src) raw 0/1 adjacency (dst <- src edges).  Cast/padded
               to `compute_dtype` here; callers can cache that copy if the graph
               is reused across layers/steps.
    deg      : (N_dst,) in-degree per destination node (mean normalizer).
    feat_src : (N_src, D_in), feat_dst : (N_dst, D_in)
    w_neigh, w_self : (D_in, D_out)  (torch Linear weights transposed)
    Returns (N_dst, D_out) in `out_dtype`.
    """
    n_dst, n_src = adj.shape
    d_in = feat_src.shape[1]
    d_out = w_neigh.shape[1]
    it = jnp.dtype(compute_dtype).itemsize
    oit = jnp.dtype(out_dtype).itemsize
    # dtype-aware sublane multiple: f32 -> 8, bf16 -> 16, int8/fp8 -> 32
    sub = max(8, 32 // it)

    d_in_p = _round_up(d_in, 128)
    d_out_p = _round_up(d_out, 128)

    # Re-association (adj @ X) @ Wn == adj @ (X @ Wn): project feat_src first when
    # that shrinks the streamed/accumulated width.
    project_first = d_out_p < d_in_p
    d_s = d_out_p if project_first else d_in_p

    # dst (parallel) tile: clamp to the problem, but keep >= 2 tiles whenever
    # possible so the parallel axis can shard across both v7x TensorCores.
    tm = max(sub, _round_up(tm, sub))
    tm_eff = min(tm, _round_up(n_dst, sub))
    if _round_up(n_dst, sub) >= 2 * sub:
        tm_eff = min(tm_eff, _round_up((n_dst + 1) // 2, sub))

    # src (reduction) tile: large and lane-aligned to amortize the ~0.35us/step
    # grid overhead on this HBM-bound kernel.
    tk = max(128, _round_up(tk, 128))
    tk_eff = min(tk, _round_up(n_src, 128))

    budget = _vmem_budget()

    def footprint(tm_, tk_):
        # conservative: everything counted double-buffered
        f = tm_ * tk_ * it * 2                                          # adjacency tile
        f += tk_ * d_s * it * 2                                         # streamed src tile
        f += tm_ * d_in_p * it * 2                                      # feat_dst tile
        f += tm_ * 4 * 2                                                # 1/deg column (f32)
        f += d_in_p * d_out_p * it * 2 * (1 if project_first else 2)    # resident weights
        f += tm_ * d_out_p * oit * 2                                    # output tile
        f += tm_ * d_s * 4                                              # f32 accumulator
        return f

    while footprint(tm_eff, tk_eff) > budget and tk_eff > 512:
        tk_eff = max(512, _round_up(tk_eff // 2, 128))
    while footprint(tm_eff, tk_eff) > budget and tm_eff > sub:
        tm_eff = max(sub, _round_up(tm_eff // 2, sub))
    # TODO(synk): for D_in/D_out in the multi-thousand range the resident weight
    # blocks should get their own (parallel) d_out grid axis to stay under v7x VMEM.

    n_dst_p = _round_up(n_dst, tm_eff)
    n_src_p = _round_up(n_src, tk_eff)
    vmem_limit = int(min(budget, max(32 * 1024 * 1024,
                                     footprint(tm_eff, tk_eff) + 8 * 1024 * 1024)))

    # Zero padding is semantics-preserving: padded src rows/cols hit zero adjacency
    # columns / zero weight rows; padded dst rows & out cols are sliced off.  The
    # adjacency stays exact 0/1 in compute_dtype; the mean 1/deg scaling is done in
    # f32 inside the kernel (no full-matrix adj/deg normalize pass in the wrapper).
    adj_p = _pad2(adj, n_dst_p, n_src_p).astype(compute_dtype)
    xdst_p = _pad2(feat_dst, n_dst_p, d_in_p).astype(compute_dtype)
    ws_p = _pad2(w_self, d_in_p, d_out_p).astype(compute_dtype)
    wn_p = _pad2(w_neigh, d_in_p, d_out_p).astype(compute_dtype)
    inv_deg = jnp.where(deg > 0, 1.0 / jnp.maximum(deg.astype(jnp.float32), 1.0), 0.0)
    inv_deg_p = jnp.pad(inv_deg, (0, n_dst_p - n_dst)).reshape(n_dst_p, 1)

    if project_first:
        xsrc_p = _pad2(feat_src, n_src_p, d_in_p).astype(compute_dtype)
        src_p = _project_src(xsrc_p, wn_p, tk_eff, budget)   # (n_src_p, d_out_p)
        kernel = _sage_kernel_pre
        weight_operands = (ws_p,)
        weight_specs = (_resident_spec((d_in_p, d_out_p), lambda i, k: (0, 0)),)
    else:
        src_p = _pad2(feat_src, n_src_p, d_in_p).astype(compute_dtype)
        kernel = _sage_kernel_post
        weight_operands = (wn_p, ws_p)
        weight_specs = (_resident_spec((d_in_p, d_out_p), lambda i, k: (0, 0)),
                        _resident_spec((d_in_p, d_out_p), lambda i, k: (0, 0)))

    grid = (n_dst_p // tm_eff, n_src_p // tk_eff)

    out_p = pl.pallas_call(
        kernel,
        out_shape=jax.ShapeDtypeStruct((n_dst_p, d_out_p), out_dtype),
        grid_spec=pltpu.PrefetchScalarGridSpec(
            num_scalar_prefetch=0,
            grid=grid,
            in_specs=[
                pl.BlockSpec((tm_eff, tk_eff), lambda i, k: (i, k)),   # adjacency tile
                pl.BlockSpec((tk_eff, d_s), lambda i, k: (k, 0)),      # src feats / projected src
                pl.BlockSpec((tm_eff, d_in_p), lambda i, k: (i, 0)),   # dst feats
                pl.BlockSpec((tm_eff, 1), lambda i, k: (i, 0)),        # 1/deg (f32)
                *weight_specs,
            ],
            out_specs=pl.BlockSpec((tm_eff, d_out_p), lambda i, k: (i, 0)),
            scratch_shapes=[pltpu.VMEM((tm_eff, d_s), jnp.float32)],
        ),
        compiler_params=pltpu.CompilerParams(
            dimension_semantics=("parallel", "arbitrary"),
            vmem_limit_bytes=vmem_limit,
        ),
    )(adj_p, src_p, xdst_p, inv_deg_p, *weight_operands)

    return out_p[:n_dst, :d_out]


# --------------------------------------------------------------------------- helpers


def xavier_uniform(key, shape_out_in, gain):
    # matches torch.nn.init.xavier_uniform_ on a Linear weight of shape (out, in)
    fan_out, fan_in = shape_out_in
    bound = gain * np.sqrt(6.0 / (fan_in + fan_out))
    return jax.random.uniform(key, shape_out_in, jnp.float32, -bound, bound)


def _reference(adj, deg, feat_src, feat_dst, w_neigh, w_self):
    a = np.asarray(adj, np.float64)
    d = np.asarray(deg, np.float64)
    inv = np.where(d > 0, 1.0 / np.maximum(d, 1.0), 0.0)[:, None]
    h_neigh = (a @ np.asarray(feat_src, np.float64)) * inv
    return (h_neigh @ np.asarray(w_neigh, np.float64)
            + np.asarray(feat_dst, np.float64) @ np.asarray(w_self, np.float64))


if __name__ == "__main__":
    key = jax.random.PRNGKey(0)
    N_src, N_dst = 384, 64
    k_adj, k_a, k_b, k_reuse = jax.random.split(key, 4)

    # random bipartite block graph (src -> dst): raw 0/1 adjacency + in-degree.
    # (Graph-construction-time work; not part of the per-layer hot path.)
    # TODO(synk): for real sparse graphs, a scalar-prefetch gather formulation
    # (neighbor indices in SMEM driving the feat_src index_map) should replace
    # the dense adjacency matmul; only the dense formulation is kernelized here.
    adj = (jax.random.uniform(k_adj, (N_dst, N_src)) < 0.1).astype(jnp.float32)
    deg = adj.sum(axis=1)

    gain = float(np.sqrt(2.0))  # nn.init.calculate_gain('relu')

    # ---- Test A: d_out_p == d_in_p -> post-projection kernel, f32 compute, small
    # explicit tiles so both grid axes take multiple steps (K accumulator path).
    D_in_a, D_out_a = 48, 40
    ka1, ka2, ka3 = jax.random.split(k_a, 3)
    feat_src_a = jax.random.normal(ka1, (N_src, D_in_a), jnp.float32)
    feat_dst_a = feat_src_a[:N_dst]                      # block-graph semantics
    wn_a = xavier_uniform(ka2, (D_out_a, D_in_a), gain).T
    ws_a = xavier_uniform(ka3, (D_out_a, D_in_a), gain).T
    rst = sage_conv_mean(adj, deg, feat_src_a, feat_dst_a, wn_a, ws_a,
                         tm=32, tk=128, compute_dtype=jnp.float32)
    rst = jax.block_until_ready(rst)
    ref_a = _reference(adj, deg, feat_src_a, feat_dst_a, wn_a, ws_a)
    np.testing.assert_allclose(np.asarray(rst, np.float64), ref_a, rtol=2e-2, atol=2e-2)

    # ---- Test B: d_out < d_in -> re-associated (project-first) path, bf16 compute,
    # default large tiles, bf16 output.
    D_in_b, D_out_b = 192, 64
    kb1, kb2, kb3 = jax.random.split(k_b, 3)
    feat_src_b = jax.random.normal(kb1, (N_src, D_in_b), jnp.float32)
    feat_dst_b = feat_src_b[:N_dst]
    wn_b = xavier_uniform(kb2, (D_out_b, D_in_b), gain).T
    ws_b = xavier_uniform(kb3, (D_out_b, D_in_b), gain).T
    rst_b = sage_conv_mean(adj, deg, feat_src_b, feat_dst_b, wn_b, ws_b,
                           compute_dtype=jnp.bfloat16, out_dtype=jnp.bfloat16)
    rst_b = jax.block_until_ready(rst_b)
    ref_b = _reference(adj, deg, feat_src_b, feat_dst_b, wn_b, ws_b)
    np.testing.assert_allclose(np.asarray(rst_b, np.float64), ref_b, rtol=6e-2, atol=1e-1)

    # ---------- cache-reuse bookkeeping (flag == 0 path), plain-JAX/host glue ----------
    # TODO(synk): 'pool'/'lstm' aggregators and the DGL graph object itself have no
    # clean Pallas equivalent; only the 'mean' aggregator hot path is kernelized.
    step, flag = 0, 0
    reuse_indices = np.array([2, 5], dtype=np.int32)
    cache_indices_next = np.array([0, 3, 7], dtype=np.int32)
    prev_layer_repeat = [
        (np.array([], dtype=np.int32), reuse_indices),
        (cache_indices_next, np.array([], dtype=np.int32)),
    ]
    reuse_embedding = jax.random.normal(k_reuse, (len(reuse_indices), D_out_a), jnp.float32)

    if flag == 0:
        cache_embedding = jnp.zeros((0, D_out_a), jnp.float32)
        ridx = prev_layer_repeat[step][1]
        rst_full = rst
        if len(ridx) > 0:
            full_dst_len = rst.shape[0] + len(ridx)
            unprune_indices = np.delete(np.arange(full_dst_len), ridx)
            full_dst_feat = jnp.zeros((full_dst_len, rst.shape[1]), jnp.float32)
            full_dst_feat = full_dst_feat.at[unprune_indices].set(rst)
            full_dst_feat = full_dst_feat.at[ridx].set(reuse_embedding)
            rst_full = full_dst_feat
        if step + 1 < len(prev_layer_repeat):   # explicit bounds check (no silent except)
            cache_idx = prev_layer_repeat[step + 1][0]
            cache_embedding = jax.lax.stop_gradient(rst_full[cache_idx])
        out = (rst_full, cache_embedding)
    else:
        out = rst

    jax.block_until_ready(out)
    print("KERNEL_OK")
</pallas_src>

<mosaic_0001>
module attributes {stable_mosaic.version = 11 : i64} {
  func.func @_sage_kernel_post(%arg0: i32, %arg1: i32, %arg2: memref<32x128xf32, #tpu.memory_space<vmem>>, %arg3: memref<128x128xf32, #tpu.memory_space<vmem>>, %arg4: memref<32x128xf32, #tpu.memory_space<vmem>>, %arg5: memref<32x1xf32, #tpu.memory_space<vmem>>, %arg6: memref<128x128xf32, #tpu.memory_space<vmem>>, %arg7: memref<128x128xf32, #tpu.memory_space<vmem>>, %arg8: memref<32x128xf32, #tpu.memory_space<vmem>>, %arg9: memref<32x128xf32, #tpu.memory_space<vmem>>) attributes {dimension_semantics = [#tpu.dimension_semantics<parallel>, #tpu.dimension_semantics<arbitrary>], iteration_bounds = array<i64: 2, 3>, scalar_prefetch = 0 : i64, scratch_operands = 1 : i64, tpu.core_type = #tpu.core_type<tc>, window_params = [{transform_indices = @transform_0, window_bounds = array<i64: 32, 128>}, {transform_indices = @transform_1, window_bounds = array<i64: 128, 128>}, {transform_indices = @transform_2, window_bounds = array<i64: 32, 128>}, {transform_indices = @transform_3, window_bounds = array<i64: 32, 1>}, {pipeline_mode = #tpu.pipeline_mode<synchronous>, transform_indices = @transform_4, window_bounds = array<i64: 128, 128>}, {pipeline_mode = #tpu.pipeline_mode<synchronous>, transform_indices = @transform_5, window_bounds = array<i64: 128, 128>}, {transform_indices = @transform_6, window_bounds = array<i64: 32, 128>}]} {
    %c0_i32 = arith.constant 0 : i32
    %0 = arith.cmpi eq, %arg1, %c0_i32 : i32
    %1 = arith.extui %0 : i1 to i32
    %c0_i32_0 = arith.constant 0 : i32
    %2 = arith.cmpi ne, %1, %c0_i32_0 : i32
    scf.if %2 {
      %cst_9 = arith.constant 0.000000e+00 : f32
      %12 = vector.broadcast %cst_9 : f32 to vector<32x128xf32>
      %c0_10 = arith.constant 0 : index
      %c0_11 = arith.constant 0 : index
      %13 = vector.load %arg9[%c0_10, %c0_11] : memref<32x128xf32, #tpu.memory_space<vmem>>, vector<32x128xf32>
      tpu.vector_store %arg9[%c0_10, %c0_11], %12 {strides = array<i32>} : memref<32x128xf32, #tpu.memory_space<vmem>>, vector<32x128xf32>,
    } else {
    }
    %c0 = arith.constant 0 : index
    %c0_1 = arith.constant 0 : index
    %3 = vector.load %arg9[%c0, %c0_1] : memref<32x128xf32, #tpu.memory_space<vmem>>, vector<32x128xf32>
    %c0_2 = arith.constant 0 : index
    %c0_3 = arith.constant 0 : index
    %4 = vector.load %arg2[%c0_2, %c0_3] : memref<32x128xf32, #tpu.memory_space<vmem>>, vector<32x128xf32>
    %c0_4 = arith.constant 0 : index
    %c0_5 = arith.constant 0 : index
    %5 = vector.load %arg3[%c0_4, %c0_5] : memref<128x128xf32, #tpu.memory_space<vmem>>, vector<128x128xf32>
    %cst = arith.constant dense<0.000000e+00> : vector<32x128xf32>
    %6 = tpu.matmul %4, %5, %cst {dimension_numbers = #tpu.dot_dimension_numbers<[1], [0], [0], [1], [0, 0, 1, 1], [], []>} : vector<32x128xf32>, vector<128x128xf32>, vector<32x128xf32> -> vector<32x128xf32>
    %7 = arith.addf %3, %6 : vector<32x128xf32>
    %c0_6 = arith.constant 0 : index
    %c0_7 = arith.constant 0 : index
    %8 = vector.load %arg9[%c0_6, %c0_7] : memref<32x128xf32, #tpu.memory_space<vmem>>, vector<32x128xf32>
    tpu.vector_store %arg9[%c0_6, %c0_7], %7 {strides = array<i32>} : memref<32x128xf32, #tpu.memory_space<vmem>>, vector<32x128xf32>,
    %c2_i32 = arith.constant 2 : i32
    %9 = arith.cmpi eq, %arg1, %c2_i32 : i32
    %10 = arith.extui %9 : i1 to i32
    %c0_i32_8 = arith.constant 0 : i32
    %11 = arith.cmpi ne, %10, %c0_i32_8 : i32
    scf.if %11 {
      %c0_9 = arith.constant 0 : index
      %c0_10 = arith.constant 0 : index
      %12 = vector.load %arg9[%c0_9, %c0_10] : memref<32x128xf32, #tpu.memory_space<vmem>>, vector<32x128xf32>
      %c0_11 = arith.constant 0 : index
      %c0_12 = arith.constant 0 : index
      %13 = vector.load %arg5[%c0_11, %c0_12] : memref<32x1xf32, #tpu.memory_space<vmem>>, vector<32x1xf32>
      %14 = vector.broadcast %13 : vector<32x1xf32> to vector<32x128xf32>
      %15 = arith.mulf %12, %14 : vector<32x128xf32>
      %c0_13 = arith.constant 0 : index
      %c0_14 = arith.constant 0 : index
      %16 = vector.load %arg6[%c0_13, %c0_14] : memref<128x128xf32, #tpu.memory_space<vmem>>, vector<128x128xf32>
      %cst_15 = arith.constant dense<0.000000e+00> : vector<32x128xf32>
      %17 = tpu.matmul %15, %16, %cst_15 {dimension_numbers = #tpu.dot_dimension_numbers<[1], [0], [0], [1], [0, 0, 1, 1], [], []>} : vector<32x128xf32>, vector<128x128xf32>, vector<32x128xf32> -> vector<32x128xf32>
      %c0_16 = arith.constant 0 : index
      %c0_17 = arith.constant 0 : index
      %18 = vector.load %arg4[%c0_16, %c0_17] : memref<32x128xf32, #tpu.memory_space<vmem>>, vector<32x128xf32>
      %c0_18 = arith.constant 0 : index
      %c0_19 = arith.constant 0 : index
      %19 = vector.load %arg7[%c0_18, %c0_19] : memref<128x128xf32, #tpu.memory_space<vmem>>, vector<128x128xf32>
      %cst_20 = arith.constant dense<0.000000e+00> : vector<32x128xf32>
      %20 = tpu.matmul %18, %19, %cst_20 {dimension_numbers = #tpu.dot_dimension_numbers<[1], [0], [0], [1], [0, 0, 1, 1], [], []>} : vector<32x128xf32>, vector<128x128xf32>, vector<32x128xf32> -> vector<32x128xf32>
      %21 = arith.addf %17, %20 : vector<32x128xf32>
      %c0_21 = arith.constant 0 : index
      %c0_22 = arith.constant 0 : index
      %22 = vector.load %arg8[%c0_21, %c0_22] : memref<32x128xf32, #tpu.memory_space<vmem>>, vector<32x128xf32>
      tpu.vector_store %arg8[%c0_21, %c0_22], %21 {strides = array<i32>} : memref<32x128xf32, #tpu.memory_space<vmem>>, vector<32x128xf32>,
    } else {
    }
    return
  }
  func.func @transform_0(%arg0: i32, %arg1: i32) -> (i32, i32) {
    %c0_i32 = arith.constant 0 : i32
    return %arg0, %arg1 : i32, i32
  }
  func.func @transform_1(%arg0: i32, %arg1: i32) -> (i32, i32) {
    %c0_i32 = arith.constant 0 : i32
    %c0_i32_0 = arith.constant 0 : i32
    return %arg1, %c0_i32 : i32, i32
  }
  func.func @transform_2(%arg0: i32, %arg1: i32) -> (i32, i32) {
    %c0_i32 = arith.constant 0 : i32
    %c0_i32_0 = arith.constant 0 : i32
    return %arg0, %c0_i32 : i32, i32
  }
  func.func @transform_3(%arg0: i32, %arg1: i32) -> (i32, i32) {
    %c0_i32 = arith.constant 0 : i32
    %c0_i32_0 = arith.constant 0 : i32
    return %arg0, %c0_i32 : i32, i32
  }
  func.func @transform_4(%arg0: i32, %arg1: i32) -> (i32, i32) {
    %c0_i32 = arith.constant 0 : i32
    %c0_i32_0 = arith.constant 0 : i32
    %c0_i32_1 = arith.constant 0 : i32
    return %c0_i32, %c0_i32_0 : i32, i32
  }
  func.func @transform_5(%arg0: i32, %arg1: i32) -> (i32, i32) {
    %c0_i32 = arith.constant 0 : i32
    %c0_i32_0 = arith.constant 0 : i32
    %c0_i32_1 = arith.constant 0 : i32
    return %c0_i32, %c0_i32_0 : i32, i32
  }
  func.func @transform_6(%arg0: i32, %arg1: i32) -> (i32, i32) {
    %c0_i32 = arith.constant 0 : i32
    %c0_i32_0 = arith.constant 0 : i32
    return %arg0, %c0_i32 : i32, i32
  }
}

</mosaic_0001>

<bundles_post_ra>
// kernel: tpu_custom_call.1
= control target key start
LH: loop header
LB: loop body
LE: loop exit
PB: predicated region body
PF: predicated region fallthrough
CT: control target
= control target key end

     0   :  { %s2215_s0 = inlined_call_operand.hbm [shape: f32[64,384], index: 0, kind: input, shape index: {}]   ;;  %s2216_s1 = inlined_call_operand.hbm [shape: f32[384,128], index: 1, kind: input, shape index: {}]   ;;  %s2217_s2 = inlined_call_operand.vmem [shape: f32[64,128], index: 2, kind: input, shape index: {}]   ;;  %s2218_s3 = inlined_call_operand.vmem [shape: f32[64,1], index: 3, kind: input, shape index: {}]   ;;  %s2219_s4 = inlined_call_operand.hbm [shape: f32[128,128], index: 4, kind: input, shape index: {}]   ;;  %s2220_s5 = inlined_call_operand.hbm [shape: f32[128,128], index: 5, kind: input, shape index: {}]   ;;  %s2221_s6 = inlined_call_operand.hbm [shape: f32[64,128], index: 6, kind: output, shape index: {}]  }
   0x1   :  { %2245 = sst [smem:[#allocation26_spill]] %s2215_s0 }
   0x2   :  { %2246 = sst [smem:[#allocation27_spill]] %s2217_s2 }
   0x3   :  { %2247 = sst [smem:[#allocation28_spill]] %s2218_s3 }
   0x4   :  { %2248 = sst [smem:[#allocation29_spill]] %s2219_s4 }
   0x5   :  { %2249 = sst [smem:[#allocation30_spill]] %s2220_s5 }
   0x6   :  { %2250 = sst [smem:[#allocation31_spill]] %s2221_s6 }
   0x7   :  { %11 = vsyncpa [#allocation4], 0 }
   0x8   :  { %13 = vsyncpa [#allocation4 + $0x1], 0 }
   0x9   :  { %14 = vsyncpa [#allocation7], 0 }
   0xa   :  { %16 = vsyncpa [#allocation7 + $0x1], 0 }
   0xb   :  { %17 = vsyncpa [#allocation10], 0 }
   0xc   :  { %18 = vsyncpa [#allocation5], 0 }
   0xd   :  { %20 = vsyncpa [#allocation5 + $0x1], 0  ;;  %s1746_s21 = smov 0   ;;  %s1748_s22 = smov 0  }
   0xe   :  { %s1750_s23 = smov 0   ;;  %s1752_s24 = smov 0  }
   0xf   :  { %s1754_s25 = smov 0   ;;  %s1756_s26 = smov 0  }
  0x10   :  { %s1758_s27 = smov 0   ;;  %s1760_s28 = smov 0  }
  0x11   :  { %s1762_s29 = smov 0   ;;  %s1764_s30 = smov 0  }
  0x12   :  { %s1766_s7 = smov 0   ;;  %s1768_s8 = smov 0  }
  0x13   :  { %s1770_s9 = smov 0   ;;  %s1772_s10 = smov 0  }
  0x14 LB: > { %2251 = sst [smem:[#allocation17_spill]] %s1645_s21  ;;  %s1813_s11 = sadd.s32 4294967295, %s1697_s10   ;;  %s1697_s10 = sphi %s1772_s10, %s26_s10   ;;  %s1693_s9 = sphi %s1770_s9, %s2318_s9   ;;  %s1689_s8 = sphi %s1768_s8, %s2317_s8   ;;  %s1685_s7 = sphi %s1766_s7, %s2316_s7   ;;  %s1681_s30 = sphi %s1764_s30, %s2315_s30   ;;  %s1677_s29 = sphi %s1762_s29, %s2314_s29   ;;  %s1673_s28 = sphi %s1760_s28, %s2313_s28   ;;  %s1669_s27 = sphi %s1758_s27, %s2312_s27   ;;  %s1665_s26 = sphi %s1756_s26, %s2311_s26   ;;  %s1661_s25 = sphi %s1754_s25, %s2310_s25   ;;  %s1657_s24 = sphi %s1752_s24, %s2309_s24   ;;  %s1653_s23 = sphi %s1750_s23, %s2308_s23   ;;  %s1649_s22 = sphi %s1748_s22, %s2307_s22   ;;  %s1645_s21 = sphi %s1746_s21, %s2306_s21  }
  0x15   : > { %2252 = sst [smem:[#allocation18_spill]] %s1649_s22  ;;  %s940_s12 = sadd.s32 4294967294, %s1697_s10  }
  0x16   : > { %2253 = sst [smem:[#allocation19_spill]] %s1681_s30  ;;  %p60_p0 = scmp.ne.s32.totalorder %s1673_s28, %s1669_s27 }
  0x17   : > { %2254 = sst [smem:[#allocation20_spill]] %s1685_s7  ;;  %p2227_p1 = scmp.eq.s32.totalorder %s1813_s11, 0 }
  0x18   : > { %2255 = sst [smem:[#allocation21_spill]] %s1813_s11  ;;  %p86_p2 = scmp.ne.s32.totalorder %s1661_s25, %s1657_s24 }
  0x19   : > { %p1822_p3 = por %p2227_p1, %p60_p0  ;;  %p203_p4 = scmp.ne.s32.totalorder %s1653_s23, %s1649_s22 }
  0x1a   : > { %p1830_p5 = por %p86_p2, %p2227_p1  ;;  %p204_p6 = scmp.eq.s32.totalorder %s1813_s11, 5 }
  0x1b   : > { %s2256_s14 = scalar_select %p1822_p3, 1, 0 }
  0x1c   : > { %s2257_s15 = scalar_select %p1830_p5, 1, 0 }
  0x1d   : > { %p209_p7 = scmp.ne.s32.totalorder %s1649_s22, %s1645_s21  ;;  %p210_p8 = scmp.eq.s32.totalorder %s940_s12, 5 }
  0x1e   : > { %2258 = sst [smem:[#allocation22_spill]] %s2257_s15  ;;  %p1837_p9 = por %p204_p6, %p203_p4 }
  0x1f   : > { %p941_p10 = scmp.ge.s32.totalorder %s1697_s10, 1  ;;  %p1842_p11 = por %p210_p8, %p209_p7 }
  0x20   : > { %s2259_s16 = scalar_select %p1837_p9, 1, 0 }
  0x21   : > { %s2261_s17 = scalar_select %p1842_p11, 1, 0 }
  0x22   : > { %2260 = sst [smem:[#allocation23_spill]] %s2259_s16  ;;  %p217_p12 = scmp.lt.s32.totalorder %s1697_s10, 7 }
  0x23   : > { %2262 = sst [smem:[#allocation24_spill]] %s2261_s17  ;;  %s1699_s19 = smov [#allocation8]  }
  0x24   : > { %p1847_p13 = pnand %p941_p10, %p217_p12  ;;  %s229_s20 = sshll.u32 %s1699_s19, 4  ;;  %s230_s20 = int_to_ptr.vmem [resolvable:$true] %s229_s20 }
  0x25   : > { %s1700_s27 = smov [#allocation9]   ;;  %s2265_s4 = sld [smem:[#allocation29_spill]] }
  0x26   : > { %s2263_s18 = scalar_select %p1847_p13, 1, 0 }
  0x27   : > { %p1276_p0 = pneg %p1847_p13  ;;  %s242_s12 = sshll.u32 %s1700_s27, 4  ;;  %s1859_s12 = int_to_ptr.vmem [resolvable:$true] %s242_s12 }
  0x29   : > { %p1855_p2 = pnand %p1276_p0, %p2227_p1 }
  0x2b   : > { %s1423_s21 = scalar_lea.hbm %s2265_s4, 2048  ;;  %p1425_p6 = pneg %p1855_p2 }
  0x2c   : > { %p1424_p4 = scmp.ne.s32.totalorder %s2265_s4, %s1423_s21  ;;  %p1430_p10 = scmp.lt.u32.totalorder %s1423_s21, %s2265_s4 }
  0x2e   : > { %p1426_p7 = pnand %p1425_p6, %p1424_p4 }
  0x30   : > { %p1427_p8 = pneg %p1426_p7 }
  0x32   : > { %p1432_p12 = pnand %p1430_p10, %p1427_p8 }
  0x34   : > { %1435 = shalt.err (!%p1432_p12)
}
  0x35   : > { %s1436_s27 = scalar_lea.vmem %s230_s20, 2048  ;;  %p1444_p9 = scmp.lt.s32.totalorder %s230_s20, %s230_s20 }
  0x36   : > { %p1437_p0 = scmp.ne.s32.totalorder %s230_s20, %s1436_s27  ;;  %p1445_p5 = scmp.lt.s32.totalorder %s1436_s27, %s1436_s27 }
  0x38   : > { %p1439_p1 = pnand %p1437_p0, %p1425_p6  ;;  %p1446_p3 = por %p1445_p5, %p1444_p9 }
  0x3a   : > { %p1440_p11 = pneg %p1439_p1 }
  0x3c   : > { %p1447_p13 = pnand %p1446_p3, %p1440_p11 }
  0x3e   : > { %1450 = shalt.err (!%p1447_p13)
}
  0x3f   : > { %s2232_s6 = smov 128   ;;  %s2234_s13 = smov 8  }
  0x40   : > { %1279 = dma.hbm_to_vmem [thread:$0]  (!%p1855_p2), %s2265_s4, 2048, %s230_s20, [#allocation7], %s2232_s6, %s2232_s6, %s2234_s13  }
  0x41   : > { %s2266_s5 = sld [smem:[#allocation30_spill]] }
  0x47   : > { %s1451_s19 = scalar_lea.hbm %s2266_s5, 2048 }
  0x48   : > { %p1452_p1 = scmp.ne.s32.totalorder %s2266_s5, %s1451_s19  ;;  %p1458_p9 = scmp.lt.u32.totalorder %s1451_s19, %s2266_s5 }
  0x4a   : > { %p1454_p3 = pnand %p1452_p1, %p1425_p6 }
  0x4c   : > { %p1455_p5 = pneg %p1454_p3 }
  0x4e   : > { %p1460_p11 = pnand %p1458_p9, %p1455_p5 }
  0x50   : > { %1463 = shalt.err (!%p1460_p11)
}
  0x51   : > { %s1464_s20 = scalar_lea.vmem %s1859_s12, 2048  ;;  %p1472_p8 = scmp.lt.s32.totalorder %s1859_s12, %s1859_s12 }
  0x52   : > { %p1465_p13 = scmp.ne.s32.totalorder %s1859_s12, %s1464_s20  ;;  %p1473_p10 = scmp.lt.s32.totalorder %s1464_s20, %s1464_s20 }
  0x54   : > { %p1467_p4 = pnand %p1465_p13, %p1425_p6  ;;  %p1474_p12 = por %p1473_p10, %p1472_p8 }
  0x56   : > { %p1468_p7 = pneg %p1467_p4 }
  0x58   : > { %p1475_p0 = pnand %p1474_p12, %p1468_p7 }
  0x5a   : > { %1478 = shalt.err (!%p1475_p0)
}
  0x5b   : > { %1282 = dma.hbm_to_vmem [thread:$0]  (!%p1855_p2), %s2266_s5, 2048, %s1859_s12, [#allocation10], %s2232_s6, %s2232_s6, %s2234_s13  }
  0x5c   : > { %s35_s7 = sadd.s32 1, %s1689_s8  ;;  %s38_s24 = sadd.s32 1, %s1693_s9 }
  0x5d   : > { %p36_p6 = scmp.ge.s32.totalorder %s35_s7, 3  ;;  %s47_s21 = sadd.s32 1, %s1677_s29 }
  0x5e   : > { %p54_p1 = scmp.ne.s32.totalorder %s1677_s29, %s1673_s28  ;;  %p2244_p3 = scmp.eq.s32.totalorder %s1697_s10, 0 }
  0x5f   : > { %s2320_s7 = smov (%p36_p6, %s35_s7), 0  ;;  %s2322_s24 = smov (!%p36_p6, %s38_s24), %s1693_s9 }
  0x60   : > { %2267 = sst [smem:[#allocation25_spill]] %s2320_s7  ;;  %s1925_s30 = ssub.s32 %s1689_s8, %s2320_s7 }
  0x61   : > { %p1929_p2 = por %p2244_p3, %p54_p1  ;;  %p40_p5 = scmp.ge.s32.totalorder %s2322_s24, 2 }
  0x62   : > { %p71_p9 = scmp.eq.s32.totalorder %s1925_s30, 0  ;;  %p2243_p11 = scmp.lt.s32.totalorder %s1697_s10, 6 }
  0x63   : > { %s256_s16 = sand.u32 1, %s1677_s29   ;;  %s2324_s24 = smov (%p40_p5, %s2322_s24), 0 }
  0x64   : > { %s945_s17 = sshll.u32 %s256_s16, 5  ;;  %s42_s19 = ssub.s32 %s1693_s9, %s2324_s24 }
  0x65   : > { %s44_s27 = sor.u32 %s1925_s30, %s42_s19  ;;  %p191_p13 = scmp.eq.s32.totalorder %s42_s19, 0 }
  0x66   : > { %p45_p4 = scmp.eq.s32.totalorder %s44_s27, 0  ;;  %s1261_s20 = smul.u32 12, %s1693_s9 }
  0x67   : > { %s2269_s2 = sadd.s32 1, %s1653_s23  ;;  %s260_s4 = scalar_lea.vmem [#allocation3], %s945_s17 }
  0x68   : > { %s1945_s3 = scalar_select %p191_p13, %s1653_s23, %s2269_s2  }
  0x69   : > { %s1948_s6 = scalar_select %p45_p4, %s1677_s29, %s47_s21  }
  0x6a   : > { %s266_s13 = sadd.s32 %s1689_s8, %s1261_s20  ;;  %s269_s5 = sshll.u32 %s260_s4, 4  ;;  %s1951_s5 = int_to_ptr.vmem [resolvable:$true] %s269_s5 }
  0x6b   : > { %s948_s7 = sshll.u32 %s266_s13, 7  ;;  %s2270_s0 = sld [smem:[#allocation26_spill]] }
  0x6c   : > { %p1962_p7 = pnand %p2243_p11, %p1929_p2  ;;  %s1966_s4 = scalar_lea.sflag [#allocation4], %s256_s16 }
  0x6e   : > { %p1481_p10 = pneg %p1962_p7 }
  0x71   : > { %s1956_s11 = scalar_lea.hbm %s2270_s0, %s948_s7  ;;  %s1484_s7 = scalar_lea.hbm %s2270_s0, 3072 }
  0x72   : > { %s1479_s13 = scalar_lea.hbm %s1956_s11, 512  ;;  %p1485_p6 = scmp.lt.u32.totalorder %s1956_s11, %s2270_s0 }
  0x73   : > { %p1480_p8 = scmp.ne.s32.totalorder %s1956_s11, %s1479_s13  ;;  %p1486_p1 = scmp.lt.u32.totalorder %s1484_s7, %s1479_s13 }
  0x74   : > { %p1488_p5 = scmp.lt.u32.totalorder %s1479_s13, %s1956_s11 }
  0x75   : > { %p1482_p12 = pnand %p1481_p10, %p1480_p8  ;;  %p1487_p2 = por %p1486_p1, %p1485_p6 }
  0x77   : > { %p1483_p0 = pneg %p1482_p12  ;;  %p1489_p13 = por %p1488_p5, %p1487_p2 }
  0x79   : > { %p1490_p4 = pnand %p1489_p13, %p1483_p0 }
  0x7b   : > { %1493 = shalt.err (!%p1490_p4)
}
  0x7c   : > { %s1494_s16 = scalar_lea.vmem %s1951_s5, 512  ;;  %s1703_s19 = smov [#allocation3]  }
  0x7d   : > { %p1495_p8 = scmp.ne.s32.totalorder %s1951_s5, %s1494_s16  ;;  %s1499_s27 = sshll.u32 %s1703_s19, 4  ;;  %s1500_s27 = int_to_ptr.vmem [resolvable:$false] %s1499_s27 }
  0x7e   : > { %s1501_s20 = scalar_lea.vmem %s1500_s27, 1024  ;;  %p1502_p3 = scmp.lt.s32.totalorder %s1951_s5, %s1500_s27 }
  0x7f   : > { %p1497_p12 = pnand %p1495_p8, %p1481_p10  ;;  %p1503_p6 = scmp.lt.s32.totalorder %s1501_s20, %s1494_s16 }
  0x81   : > { %p1498_p11 = pneg %p1497_p12  ;;  %p1504_p1 = por %p1503_p6, %p1502_p3 }
  0x83   : > { %p1505_p2 = pnand %p1504_p1, %p1498_p11 }
  0x85   : > { %1508 = shalt.err (!%p1505_p2)
}
  0x86   : > { %s1704_s2 = smov 384   ;;  %s2272_s13 = smov 8  }
  0x87   : > { %s2273_s22 = smov 128   ;;  %s73_s15 = sadd.s32 1, %s1665_s26 }
  0x88   : > { %1286 = dma.hbm_to_vmem [thread:$0]  (!%p1962_p7), %s1956_s11, 512, %s1951_s5, %s1966_s4, %s1704_s2, %s2273_s22, %s2272_s13  }
  0x89   : > { %p80_p3 = scmp.ne.s32.totalorder %s1665_s26, %s1661_s25  ;;  %p2274_p11 = scmp.eq.s32.totalorder %s1697_s10, 0 }
  0x8a   : > { %s2002_s21 = scalar_select %p71_p9, %s1665_s26, %s73_s15  }
  0x8b   : > { %p82_p10 = por %p80_p3, %p2274_p11  ;;  %s279_s7 = sand.u32 1, %s1697_s10  }
  0x8c   : > { %s281_s12 = sand.u32 1, %s1665_s26   ;;  %s969_s16 = sshll.u32 %s1689_s8, 11 }
  0x8d   : > { %s949_s17 = sshll.u32 %s281_s12, 7  ;;  %s2012_s20 = scalar_lea.hbm %s2216_s1, %s969_s16 }
  0x8e   : > { %s283_s5 = scalar_lea.vmem [#allocation6], %s949_s17  ;;  %p2275_p7 = scmp.lt.s32.totalorder %s1697_s10, 6 }
  0x8f   : > { %s290_s11 = sshll.u32 %s283_s5, 4  ;;  %s2022_s4 = scalar_lea.sflag [#allocation7], %s279_s7  ;;  %s2020_s11 = int_to_ptr.vmem [resolvable:$true] %s290_s11 }
  0x90   : > { %p2016_p9 = pnand %p2275_p7, %p82_p10  ;;  %s1509_s2 = scalar_lea.hbm %s2012_s20, 2048 }
  0x91   : > { %p1510_p0 = scmp.ne.s32.totalorder %s2012_s20, %s1509_s2  ;;  %s1514_s17 = scalar_lea.hbm %s2216_s1, 6144 }
  0x92   : > { %p1511_p5 = pneg %p2016_p9  ;;  %p1515_p8 = scmp.lt.u32.totalorder %s2012_s20, %s2216_s1 }
  0x93   : > { %p1516_p12 = scmp.lt.u32.totalorder %s1514_s17, %s1509_s2  ;;  %p1518_p1 = scmp.lt.u32.totalorder %s1509_s2, %s2012_s20 }
  0x94   : > { %p1512_p13 = pnand %p1511_p5, %p1510_p0 }
  0x95   : > { %p1517_p6 = por %p1516_p12, %p1515_p8 }
  0x96   : > { %p1513_p4 = pneg %p1512_p13 }
  0x97   : > { %p1519_p2 = por %p1518_p1, %p1517_p6 }
  0x99   : > { %p1520_p3 = pnand %p1519_p2, %p1513_p4 }
  0x9b   : > { %1523 = shalt.err (!%p1520_p3)
}
  0x9c   : > { %s1524_s7 = scalar_lea.vmem %s2020_s11, 2048  ;;  %s1705_s27 = smov [#allocation6]  }
  0x9d   : > { %p1525_p11 = scmp.ne.s32.totalorder %s2020_s11, %s1524_s7  ;;  %s1529_s5 = sshll.u32 %s1705_s27, 4  ;;  %s1530_s5 = int_to_ptr.vmem [resolvable:$false] %s1529_s5 }
  0x9e   : > { %s1531_s15 = scalar_lea.vmem %s1530_s5, 4096  ;;  %p1532_p0 = scmp.lt.s32.totalorder %s2020_s11, %s1530_s5 }
  0x9f   : > { %p1527_p10 = pnand %p1525_p11, %p1511_p5  ;;  %p1533_p13 = scmp.lt.s32.totalorder %s1531_s15, %s1524_s7 }
  0xa1   : > { %p1528_p7 = pneg %p1527_p10  ;;  %p1534_p8 = por %p1533_p13, %p1532_p0 }
  0xa3   : > { %p1535_p12 = pnand %p1534_p8, %p1528_p7 }
  0xa5   : > { %1538 = shalt.err (!%p1535_p12)
}
  0xa6   : > { %1289 = dma.hbm_to_vmem [thread:$0]  (!%p2016_p9), %s2012_s20, 2048, %s2020_s11, %s2022_s4, %s2273_s22, %s2273_s22, %s2272_s13  }
  0xa7   : > { %p2277_p5 = scmp.ne.s32.totalorder %s2263_s18, 0 }
  0xa8   : > { %s322_s2 = sand.u32 (!%p2277_p5), 1, %s1673_s28   ;;  %p2278_p4 = scmp.ne.s32.totalorder (!%p2277_p5), %s2256_s14, 0 }
  0xa9   : > { %320 = sbr.rel (%p2277_p5) target bundleno = 719 (0x2cf), region = 44  ;;  %s953_s12 = sshll.u32 (!%p2277_p5), %s322_s2, 5 }
  0xaa   : > { %s323_s17 = scalar_lea.sflag (!%p2277_p5), [#allocation4], %s322_s2  ;;  %s2056_s16 = scalar_lea.vmem (!%p2277_p5), [#allocation3], %s953_s12 }
  0xb0   : > { %1624 = dma.done.wait (%p2278_p4), %s323_s17, 512  }
  0xb1   : > { %1626 = vsyncadd (%p2278_p4), %s323_s17, 4294966784  ;;  %s2279_s30 = sld [smem:[#allocation21_spill]]  ;;  %s2280_s19 = sld [smem:[#allocation22_spill]] }
  0xb2   : > { %s333_s13 = sand.u32 1, %s1661_s25  }
  0xb3   : > { %s954_s22 = sshll.u32 %s333_s13, 7 }
  0xb4   : > { %s2064_s20 = scalar_lea.vmem [#allocation6], %s954_s22 }
  0xb7   : > { %s331_s7 = sand.u32 1, %s2279_s30   ;;  %p2281_p9 = scmp.ne.s32.totalorder %s2280_s19, 0 }
  0xb8   : > { %s332_s18 = scalar_lea.sflag [#allocation7], %s331_s7 }
  0xb9   : > { %1628 = dma.done.wait (%p2281_p9), %s332_s18, 2048  }
  0xba   : > { %1630 = vsyncadd (%p2281_p9), %s332_s18, 4294965248  ;;  %p2282_p6 = scmp.eq.s32.totalorder %s2279_s30, 0 }
  0xbc   : > { %1632 = dma.done.wait (%p2282_p6), [#allocation7], 2048   ;;  %p2283_p1 = pmov %p2282_p6 }
  0xbe   : > { %1634 = vsyncadd (%p2283_p1), [#allocation7], 4294965248  ;;  %p2284_p2 = pmov %p2283_p1 }
  0xbf   : > { %p2285_p3 = pmov %p2283_p1 }
  0xc0   : > { %1636 = dma.done.wait (%p2284_p2), [#allocation10], 2048  }
  0xc1   : > { %1638 = vsyncadd (%p2285_p3), [#allocation10], 4294965248  ;;  %s2286_s14 = sld [smem:[#allocation18_spill]]  ;;  %s2287_s11 = sld [smem:[#allocation20_spill]] }
  0xc2   : > { %s2288_s17 = sld [smem:[#allocation27_spill]]  ;;  %s2289_s22 = sld [smem:[#allocation28_spill]] }
  0xc3   : > { %s2290_s0 = sld [smem:[#allocation19_spill]] }
  0xc7   : > { %s384_s4 = sand.u32 1, %s2286_s14   ;;  %s958_s27 = sshll.u32 %s2287_s11, 2 }
  0xc8   : > { %s957_s5 = sshll.u32 %s384_s4, 5  ;;  %p390_p11 = scmp.lt.s32.totalorder %s958_s27, 7 }
  0xc9   : > { %s2092_s18 = scalar_lea.vmem [#allocation11], %s957_s5  ;;  %p962_p10 = scmp.ne.s32.totalorder %s2290_s0, 0 }
  0xca   : > { %s2326_s27 = smov (!%p390_p11, %s958_s27), 7  ;;  %v1706_v0 = vmov (!%p962_p10), 0.0  }
  0xcb   : > { %s959_s15 = sshll.u32 %s2326_s27, 3  ;;  %405 = sbr.rel (%p962_p10) target bundleno = 210 (0xd2), region = 64  ;;  %406 = vst [vmem:[#allocation2] sm:$0xff] (!%p962_p10), %v1706_v0  ;;  %407 = vst [vmem:[#allocation2 + $0x8] sm:$0xff] (!%p962_p10), %v1706_v0 }
  0xcc   : > { %s2085_s19 = scalar_lea.vmem %s2288_s17, %s959_s15  ;;  %s2090_s30 = scalar_lea.vmem %s2289_s22, %s959_s15  ;;  %408 = vst [vmem:[#allocation2 + $0x10] sm:$0xff] (!%p962_p10), %v1706_v0  ;;  %409 = vst [vmem:[#allocation2 + $0x18] sm:$0xff] (!%p962_p10), %v1706_v0 }
  0xd2 PF: > { %v418_v1 = vld [vmem:[%s2064_s20] sm:$0xff]  ;;  %v419_v2 = vld [vmem:[%s2064_s20 + $0x8] sm:$0xff]  ;;  %v420_v3 = vld [vmem:[%s2064_s20 + $0x10] sm:$0xff]  ;;  %s2291_s0 = sld [smem:[#allocation19_spill]] }
  0xd3   : > { %v1145_v4 = vpack.c.bf16 %v419_v2, %v418_v1  ;;  %v421_v5 = vld [vmem:[%s2064_s20 + $0x18] sm:$0xff]  ;;  %v422_v7 = vld [vmem:[%s2064_s20 + $0x20] sm:$0xff]  ;;  %v423_v8 = vld [vmem:[%s2064_s20 + $0x28] sm:$0xff] }
  0xd4   : > { %v1149_v6 = vpack.c.bf16 %v421_v5, %v420_v3  ;;  %v1153_v9 = vpack.c.bf16 %v423_v8, %v422_v7  ;;  %v414_v10 = vld [vmem:[%s2056_s16] sm:$0xff]  ;;  %v416_v11 = vld [vmem:[%s2056_s16 + $0x10] sm:$0xff]  ;;  %v425_v13 = vld [vmem:[%s2064_s20 + $0x38] sm:$0xff] }
  0xd5   : > { %1146 = vmatprep.subr.bf16.mxu0 %v1145_v4  ;;  %1241 = vmatprep.subr.bf16.mxu1 %v1145_v4  ;;  %v424_v12 = vld [vmem:[%s2064_s20 + $0x30] sm:$0xff]  ;;  %v426_v15 = vld [vmem:[%s2064_s20 + $0x40] sm:$0xff]  ;;  %v427_v16 = vld [vmem:[%s2064_s20 + $0x48] sm:$0xff] }
  0xd6   : > { %1148 = vmatpush3.bf16.msra.mxu0 %v1145_v4  ;;  %1249 = vmatpush3.bf16.msra.mxu1 %v1145_v4  ;;  %v1157_v14 = vpack.c.bf16 %v425_v13, %v424_v12  ;;  %v1161_v17 = vpack.c.bf16 %v427_v16, %v426_v15  ;;  %v428_v18 = vld [vmem:[%s2064_s20 + $0x50] sm:$0xff]  ;;  %v429_v19 = vld [vmem:[%s2064_s20 + $0x58] sm:$0xff]  ;;  %v430_v21 = vld [vmem:[%s2064_s20 + $0x60] sm:$0xff] }
  0xd7   : > { %1150 = vmatprep.subr.bf16.mxu0 %v1149_v6  ;;  %1242 = vmatprep.subr.bf16.mxu1 %v1149_v6  ;;  %v1165_v20 = vpack.c.bf16 %v429_v19, %v428_v18  ;;  %v431_v22 = vld [vmem:[%s2064_s20 + $0x68] sm:$0xff]  ;;  %v432_v24 = vld [vmem:[%s2064_s20 + $0x70] sm:$0xff]  ;;  %v433_v25 = vld [vmem:[%s2064_s20 + $0x78] sm:$0xff] }
  0xd8   : > { %1063 = vmatprep.mubr.f32.mxu0 %v414_v10  ;;  %1066 = vmatprep.mubr.f32.mxu1 %v416_v11  ;;  %v1169_v23 = vpack.c.bf16 %v431_v22, %v430_v21  ;;  %v1173_v26 = vpack.c.bf16 %v433_v25, %v432_v24  ;;  %v415_v27 = vld [vmem:[%s2056_s16 + $0x8] sm:$0xff]  ;;  %v417_v28 = vld [vmem:[%s2056_s16 + $0x18] sm:$0xff]  ;;  %v410_v31 = vld [vmem:[#allocation2] sm:$0xff]  ;;  %p963_p7 = scmp.ne.s32.totalorder %s2291_s0, 2 }
  0xd9   : > { %v411_v29 = vld [vmem:[#allocation2 + $0x8] sm:$0xff]  ;;  %v413_v30 = vld [vmem:[#allocation2 + $0x18] sm:$0xff]  ;;  %v412_v32 = vld [vmem:[#allocation2 + $0x10] sm:$0xff]  ;;  %v1707_v43 = vmov (!%p963_p7), 0  }
  0xda   : > { %1152 = vmatpush3.bf16.msra.mxu0 %v1149_v6  ;;  %1250 = vmatpush3.bf16.msra.mxu1 %v1149_v6  ;;  %v537_v41 = vld [vmem:[%s2090_s30 + $0x10] sm:$0xff] (!%p963_p7)  ;;  %v535_v42 = vld [vmem:[%s2090_s30] sm:$0xff] (!%p963_p7)  ;;  %v538_v44 = vld [vmem:[%s2090_s30 + $0x18] sm:$0xff] (!%p963_p7) }
  0xdb   : > { %1154 = vmatprep.subr.bf16.mxu0 %v1153_v9  ;;  %1243 = vmatprep.subr.bf16.mxu1 %v1153_v9  ;;  %v536_v45 = vld [vmem:[%s2090_s30 + $0x8] sm:$0xff] (!%p963_p7)  ;;  %v583_v46 = vld [vmem:[#allocation9] sm:$0xff] (!%p963_p7)  ;;  %v585_v51 = vld [vmem:[#allocation9 + $0x10] sm:$0xff] (!%p963_p7) }
  0xdc   : > { %1422 = vset.pattern.permute.xlu1 (!%p963_p7), %v1707_v43  ;;  %1421 = vset.pattern.permute.xlu0 (!%p963_p7), %v1707_v43  ;;  %v584_v47 = vld [vmem:[#allocation9 + $0x8] sm:$0xff] (!%p963_p7)  ;;  %v563_v49 = vld [vmem:[#allocation8] sm:$0xff] (!%p963_p7)  ;;  %v586_v53 = vld [vmem:[#allocation9 + $0x18] sm:$0xff] (!%p963_p7) }
  0xdd   : > { %551 = vperm.xlu1 (!%p963_p7), %1422, %v537_v41   ;;  %541 = vperm.xlu0 (!%p963_p7), %1421, %v535_v42   ;;  %v1177_v48 = vpack.c.bf16 (!%p963_p7), %v584_v47, %v583_v46  ;;  %v564_v50 = vld [vmem:[#allocation8 + $0x8] sm:$0xff] (!%p963_p7)  ;;  %v565_v54 = vld [vmem:[#allocation8 + $0x10] sm:$0xff] (!%p963_p7)  ;;  %v566_v55 = vld [vmem:[#allocation8 + $0x18] sm:$0xff] (!%p963_p7)  ;;  %v1181_v56 = vpack.c.bf16 (!%p963_p7), %v586_v53, %v585_v51 }
  0xde   : > { %1156 = vmatpush3.bf16.msra.mxu0 %v1153_v9  ;;  %1251 = vmatpush3.bf16.msra.mxu1 %v1153_v9  ;;  %v1209_v52 = vpack.c.bf16 (!%p963_p7), %v564_v50, %v563_v49  ;;  %v1213_v57 = vpack.c.bf16 (!%p963_p7), %v566_v55, %v565_v54  ;;  %v587_v58 = vld [vmem:[#allocation9 + $0x20] sm:$0xff] (!%p963_p7)  ;;  %v588_v59 = vld [vmem:[#allocation9 + $0x28] sm:$0xff] (!%p963_p7)  ;;  %v589_v63 = vld [vmem:[#allocation9 + $0x30] sm:$0xff] (!%p963_p7) }
  0xdf   : > { %1158 = vmatprep.subr.bf16.mxu0 %v1157_v14  ;;  %1244 = vmatprep.subr.bf16.mxu1 %v1157_v14  ;;  %v567_v60 = vld [vmem:[#allocation8 + $0x20] sm:$0xff] (!%p963_p7)  ;;  %v568_v61 = vld [vmem:[#allocation8 + $0x28] sm:$0xff] (!%p963_p7)  ;;  %v1185_v62 = vpack.c.bf16 (!%p963_p7), %v588_v59, %v587_v58  ;;  %v590_v0 = vld [vmem:[#allocation9 + $0x38] sm:$0xff] (!%p963_p7) }
  0xe0   : > { %v1217_v1 = vpack.c.bf16 (!%p963_p7), %v568_v61, %v567_v60  ;;  %v569_v2 = vld [vmem:[#allocation8 + $0x30] sm:$0xff] (!%p963_p7)  ;;  %v570_v3 = vld [vmem:[#allocation8 + $0x38] sm:$0xff] (!%p963_p7)  ;;  %v1189_v4 = vpack.c.bf16 (!%p963_p7), %v590_v0, %v589_v63  ;;  %v591_v5 = vld [vmem:[#allocation9 + $0x40] sm:$0xff] (!%p963_p7) }
  0xe1   : > { %556 = vperm.xlu1 (!%p963_p7), %1422, %v538_v44   ;;  %546 = vperm.xlu0 (!%p963_p7), %1421, %v536_v45   ;;  %v592_v6 = vld [vmem:[#allocation9 + $0x48] sm:$0xff] (!%p963_p7)  ;;  %v1221_v7 = vpack.c.bf16 (!%p963_p7), %v570_v3, %v569_v2  ;;  %v571_v8 = vld [vmem:[#allocation8 + $0x40] sm:$0xff] (!%p963_p7)  ;;  %v593_v12 = vld [vmem:[#allocation9 + $0x50] sm:$0xff] (!%p963_p7) }
  0xe2   : > { %1160 = vmatpush3.bf16.msra.mxu0 %v1157_v14  ;;  %1252 = vmatpush3.bf16.msra.mxu1 %v1157_v14  ;;  %v572_v9 = vld [vmem:[#allocation8 + $0x48] sm:$0xff] (!%p963_p7)  ;;  %v579_v10 = vld [vmem:[%s2085_s19] sm:$0xff] (!%p963_p7)  ;;  %v1193_v11 = vpack.c.bf16 (!%p963_p7), %v592_v6, %v591_v5  ;;  %v594_v13 = vld [vmem:[#allocation9 + $0x58] sm:$0xff] (!%p963_p7) }
  0xe3   : > { %1162 = vmatprep.subr.bf16.mxu0 %v1161_v17  ;;  %1245 = vmatprep.subr.bf16.mxu1 %v1161_v17  ;;  %v1225_v14 = vpack.c.bf16 (!%p963_p7), %v572_v9, %v571_v8  ;;  %v573_v15 = vld [vmem:[#allocation8 + $0x50] sm:$0xff] (!%p963_p7)  ;;  %v574_v16 = vld [vmem:[#allocation8 + $0x58] sm:$0xff] (!%p963_p7)  ;;  %v595_v18 = vld [vmem:[#allocation9 + $0x60] sm:$0xff] (!%p963_p7) }
  0xe4   : > { %v596_v19 = vld [vmem:[#allocation9 + $0x68] sm:$0xff] (!%p963_p7)  ;;  %v575_v21 = vld [vmem:[#allocation8 + $0x60] sm:$0xff] (!%p963_p7)  ;;  %v597_v24 = vld [vmem:[#allocation9 + $0x70] sm:$0xff] (!%p963_p7) }
  0xe5   : > { %v576_v22 = vld [vmem:[#allocation8 + $0x68] sm:$0xff] (!%p963_p7)  ;;  %v598_v25 = vld [vmem:[#allocation9 + $0x78] sm:$0xff] (!%p963_p7) }
  0xe6   : > { %1164 = vmatpush3.bf16.msra.mxu0 %v1161_v17  ;;  %1253 = vmatpush3.bf16.msra.mxu1 %v1161_v17  ;;  %v1197_v17 = vpack.c.bf16 (!%p963_p7), %v594_v13, %v593_v12 }
  0xe7   : > { %1166 = vmatprep.subr.bf16.mxu0 %v1165_v20  ;;  %1246 = vmatprep.subr.bf16.mxu1 %v1165_v20 }
  0xea   : > { %1168 = vmatpush3.bf16.msra.mxu0 %v1165_v20  ;;  %1254 = vmatpush3.bf16.msra.mxu1 %v1165_v20  ;;  %v1229_v20 = vpack.c.bf16 (!%p963_p7), %v574_v16, %v573_v15 }
  0xeb   : > { %1170 = vmatprep.subr.bf16.mxu0 %v1169_v23  ;;  %1247 = vmatprep.subr.bf16.mxu1 %v1169_v23 }
  0xee   : > { %1172 = vmatpush3.bf16.msra.mxu0 %v1169_v23  ;;  %1255 = vmatpush3.bf16.msra.mxu1 %v1169_v23  ;;  %v1201_v23 = vpack.c.bf16 (!%p963_p7), %v596_v19, %v595_v18 }
  0xef   : > { %1174 = vmatprep.subr.bf16.mxu0 %v1173_v26  ;;  %1248 = vmatprep.subr.bf16.mxu1 %v1173_v26 }
  0xf2   : > { %1176 = vmatpush3.bf16.msra.mxu0 %v1173_v26  ;;  %1256 = vmatpush3.bf16.msra.mxu1 %v1173_v26  ;;  %v1233_v26 = vpack.c.bf16 (!%p963_p7), %v576_v22, %v575_v21 }
  0xf3   : > { %1178 = vmatprep.subr.bf16.mxu1 (!%p963_p7), %v1177_v48  ;;  %1210 = vmatprep.subr.bf16.mxu0 (!%p963_p7), %v1209_v52 }
  0xf5   : > { %1064 = vmatmul.mubr.f32.vlgmr.msra.gmra.mrb[0].mxu0 %v415_v27  ;;  %1067 = vmatmul.mubr.f32.vlgmr.msra.gmra.mrb[0].mxu1 %v417_v28  ;;  %v577_v27 = vld [vmem:[#allocation8 + $0x70] sm:$0xff] (!%p963_p7)  ;;  %v578_v28 = vld [vmem:[#allocation8 + $0x78] sm:$0xff] (!%p963_p7) }
  0xf6   : > { %1180 = vmatpush3.bf16.msra.mxu1 (!%p963_p7), %v1177_v48  ;;  %1212 = vmatpush3.bf16.msra.mxu0 (!%p963_p7), %v1209_v52 }
  0xf7   : > { %1182 = vmatprep.subr.bf16.mxu1 (!%p963_p7), %v1181_v56  ;;  %1214 = vmatprep.subr.bf16.mxu0 (!%p963_p7), %v1213_v57 }
  0xf8   : > { %1101 = vmatprep.mubr.f32.mxu1 (!%p963_p7), %v579_v10 }
  0xfa   : > { %1184 = vmatpush3.bf16.msra.mxu1 (!%p963_p7), %v1181_v56  ;;  %1216 = vmatpush3.bf16.msra.mxu0 (!%p963_p7), %v1213_v57 }
  0xfb   : > { %1186 = vmatprep.subr.bf16.mxu1 (!%p963_p7), %v1185_v62  ;;  %1218 = vmatprep.subr.bf16.mxu0 (!%p963_p7), %v1217_v1 }
  0xfe   : > { %1188 = vmatpush3.bf16.msra.mxu1 (!%p963_p7), %v1185_v62  ;;  %1220 = vmatpush3.bf16.msra.mxu0 (!%p963_p7), %v1217_v1 }
  0xff   : > { %1190 = vmatprep.subr.bf16.mxu1 (!%p963_p7), %v1189_v4  ;;  %1222 = vmatprep.subr.bf16.mxu0 (!%p963_p7), %v1221_v7 }
 0x102   : > { %1192 = vmatpush3.bf16.msra.mxu1 (!%p963_p7), %v1189_v4  ;;  %1224 = vmatpush3.bf16.msra.mxu0 (!%p963_p7), %v1221_v7 }
 0x103   : > { %1194 = vmatprep.subr.bf16.mxu1 (!%p963_p7), %v1193_v11  ;;  %1226 = vmatprep.subr.bf16.mxu0 (!%p963_p7), %v1225_v14 }
 0x106   : > { %1196 = vmatpush3.bf16.msra.mxu1 (!%p963_p7), %v1193_v11  ;;  %1228 = vmatpush3.bf16.msra.mxu0 (!%p963_p7), %v1225_v14 }
 0x107   : > { %1198 = vmatprep.subr.bf16.mxu1 (!%p963_p7), %v1197_v17  ;;  %1230 = vmatprep.subr.bf16.mxu0 (!%p963_p7), %v1229_v20 }
 0x10a   : > { %1200 = vmatpush3.bf16.msra.mxu1 (!%p963_p7), %v1197_v17  ;;  %1232 = vmatpush3.bf16.msra.mxu0 (!%p963_p7), %v1229_v20 }
 0x10b   : > { %1202 = vmatprep.subr.bf16.mxu1 (!%p963_p7), %v1201_v23  ;;  %1234 = vmatprep.subr.bf16.mxu0 (!%p963_p7), %v1233_v26 }
 0x10e   : > { %1204 = vmatpush3.bf16.msra.mxu1 (!%p963_p7), %v1201_v23  ;;  %1236 = vmatpush3.bf16.msra.mxu0 (!%p963_p7), %v1233_v26 }
 0x1c6   : > { %530 = sbr.rel (%p963_p7) target bundleno = 691 (0x2b3), region = 68 }
 0x1c8   : > { %v1065_v33 = vpop.f32.mrb[0].mxu0  ;;  %v1068_v34 = vpop.f32.mrb[0].mxu1 }
 0x1c9   : > { %v520_v35 = vadd.f32 %v1065_v33, %v411_v29  ;;  %v522_v36 = vadd.f32 %v1068_v34, %v413_v30  ;;  %v500_v37 = vpop.f32.mrb[1].mxu0  ;;  %v510_v38 = vpop.f32.mrb[1].mxu1  ;;  %v1205_v29 = vpack.c.bf16 (!%p963_p7), %v598_v25, %v597_v24  ;;  %v1237_v30 = vpack.c.bf16 (!%p963_p7), %v578_v28, %v577_v27  ;;  %v582_v33 = vld [vmem:[%s2085_s19 + $0x18] sm:$0xff] (!%p963_p7) }
 0x1ca   : > { %v519_v39 = vadd.f32 %v500_v37, %v410_v31  ;;  %v521_v40 = vadd.f32 %v510_v38, %v412_v32  ;;  %v580_v31 = vld [vmem:[%s2085_s19 + $0x8] sm:$0xff] (!%p963_p7)  ;;  %v581_v32 = vld [vmem:[%s2085_s19 + $0x10] sm:$0xff] (!%p963_p7) }
 0x1cb   : > { %524 = vst [vmem:[#allocation2 + $0x8] sm:$0xff] %v520_v35  ;;  %526 = vst [vmem:[#allocation2 + $0x18] sm:$0xff] %v522_v36  ;;  %1206 = vmatprep.subr.bf16.mxu1 (!%p963_p7), %v1205_v29  ;;  %1238 = vmatprep.subr.bf16.mxu0 (!%p963_p7), %v1237_v30  ;;  %v552_v35 = vpop.permute.xlu1 (!%p963_p7), %551  ;;  %v542_v36 = vpop.permute.xlu0 (!%p963_p7), %541 }
 0x1cc   : > { %523 = vst [vmem:[#allocation2] sm:$0xff] %v519_v39  ;;  %525 = vst [vmem:[#allocation2 + $0x10] sm:$0xff] %v521_v40  ;;  %1208 = vmatpush3.bf16.msra.mxu1 (!%p963_p7), %v1205_v29  ;;  %1240 = vmatpush3.bf16.msra.mxu0 (!%p963_p7), %v1237_v30 }
 0x1cf   : > { %1102 = vmatmul.mubr.f32.vlgmr.msra.gmra.mrb[0].mxu1 %v580_v31  ;;  %v547_v41 = vpop.permute.xlu0 %546  ;;  %v557_v43 = vpop.permute.xlu1 %556 }
 0x1d0   : > { %1104 = vmatprep.mubr.f32.mxu1 %v581_v32 }
 0x1d2   : > { %v532_v39 = vld [vmem:[#allocation2 + $0x8] sm:$0xff]  ;;  %v534_v44 = vld [vmem:[#allocation2 + $0x18] sm:$0xff] }
 0x1d3   : > { %1105 = vmatmul.mubr.f32.gmra.mrb[2].mxu1 %v582_v33  ;;  %v531_v34 = vld [vmem:[#allocation2] sm:$0xff]  ;;  %v533_v37 = vld [vmem:[#allocation2 + $0x10] sm:$0xff]  ;;  %v560_v42 = vmul.f32 %v547_v41, %v532_v39  ;;  %v562_v45 = vmul.f32 %v557_v43, %v534_v44 }
 0x1d4   : > { %v559_v38 = vmul.f32 %v542_v36, %v531_v34  ;;  %v561_v40 = vmul.f32 %v552_v35, %v533_v37 }
 0x1d6   : > { %1139 = vmatprep.mubr.f32.mxu0 %v559_v38 }
 0x1d7   : > { %1140 = vmatmul.mubr.f32.vlgmr.msra.gmra.mrb[0].mxu0 %v560_v42 }
 0x1d8   : > { %1142 = vmatprep.mubr.f32.mxu0 %v561_v40 }
 0x1db   : > { %1143 = vmatmul.mubr.f32.gmra.mrb[2].mxu0 %v562_v45 }
 0x2a2   : > { %v1103_v46 = vpop.f32.mrb[0].mxu1 }
 0x2a3   : > { %v665_v47 = vpop.f32.mrb[1].mxu1 }
 0x2a6   : > { %v1106_v48 = vpop.f32.mrb[2].mxu1 }
 0x2a7   : > { %v675_v49 = vpop.f32.mrb[3].mxu1 }
 0x2aa   : > { %v1141_v50 = vpop.f32.mrb[0].mxu0 }
 0x2ab   : > { %v756_v51 = vadd.f32 %v1141_v50, %v1103_v46  ;;  %v750_v52 = vpop.f32.mrb[1].mxu0 }
 0x2ac   : > { %v751_v53 = vadd.f32 %v750_v52, %v665_v47 }
 0x2ad   : > { %770 = vst [vmem:[%s2092_s18 + $0x8] sm:$0xff] %v756_v51 }
 0x2ae   : > { %769 = vst [vmem:[%s2092_s18] sm:$0xff] %v751_v53  ;;  %v1144_v54 = vpop.f32.mrb[2].mxu0 }
 0x2af   : > { %v766_v55 = vadd.f32 %v1144_v54, %v1106_v48  ;;  %v760_v56 = vpop.f32.mrb[3].mxu0 }
 0x2b0   : > { %v761_v57 = vadd.f32 %v760_v56, %v675_v49 }
 0x2b1   : > { %772 = vst [vmem:[%s2092_s18 + $0x18] sm:$0xff] %v766_v55 }
 0x2b2   : > { %771 = vst [vmem:[%s2092_s18 + $0x10] sm:$0xff] %v761_v57 }
 0x2b3 PF: > { %s2292_s16 = sld [smem:[#allocation20_spill]]  ;;  %s2294_s14 = sld [smem:[#allocation23_spill]] }
 0x2b4   : > { %s2295_s15 = sld [smem:[#allocation31_spill]]  ;;  %s787_s12 = sshll.u32 %s2092_s18, 4  ;;  %s2135_s12 = int_to_ptr.vmem [resolvable:$true] %s787_s12 }
 0x2b5   : > { %s2139_s17 = scalar_lea.sflag [#allocation5], %s384_s4  ;;  %s1539_s19 = scalar_lea.vmem %s2135_s12, 512 }
 0x2b6   : > { %p1540_p0 = scmp.ne.s32.totalorder %s2135_s12, %s1539_s19  ;;  %s1708_s7 = smov [#allocation11]  }
 0x2b7   : > { %s1543_s13 = sshll.u32 %s1708_s7, 4  ;;  %s1544_s13 = int_to_ptr.vmem [resolvable:$false] %s1543_s13 }
 0x2b8   : > { %s1545_s22 = scalar_lea.vmem %s1544_s13, 1024  ;;  %p1546_p5 = scmp.lt.s32.totalorder %s2135_s12, %s1544_s13 }
 0x2b9   : > { %s970_s11 = sshll.u32 %s2292_s16, 9  ;;  %p2296_p13 = scmp.ne.s32.totalorder %s2294_s14, 0 }
 0x2ba   : > { %s2132_s2 = scalar_lea.hbm %s2295_s15, %s970_s11  ;;  %p1547_p4 = scmp.lt.s32.totalorder %s1545_s22, %s1539_s19 }
 0x2bb   : > { %p1541_p8 = pnand %p1540_p0, %p2296_p13 }
 0x2bc   : > { %p1548_p9 = por %p1547_p4, %p1546_p5 }
 0x2bd   : > { %p1542_p12 = pneg %p1541_p8 }
 0x2bf   : > { %p1549_p6 = pnand %p1548_p9, %p1542_p12 }
 0x2c1   : > { %1552 = shalt.err (!%p1549_p6)
}
 0x2c2   : > { %s1553_s4 = scalar_lea.hbm %s2132_s2, 512  ;;  %s1557_s0 = scalar_lea.hbm %s2295_s15, 1024 }
 0x2c3   : > { %p1554_p1 = scmp.ne.s32.totalorder %s2132_s2, %s1553_s4  ;;  %p1558_p11 = scmp.lt.u32.totalorder %s2132_s2, %s2295_s15 }
 0x2c4   : > { %p1559_p10 = scmp.lt.u32.totalorder %s1557_s0, %s1553_s4  ;;  %p1561_p0 = scmp.lt.u32.totalorder %s1553_s4, %s2132_s2 }
 0x2c5   : > { %p1555_p2 = pnand %p1554_p1, %p2296_p13 }
 0x2c6   : > { %p1560_p7 = por %p1559_p10, %p1558_p11 }
 0x2c7   : > { %p1556_p3 = pneg %p1555_p2 }
 0x2c8   : > { %p1562_p8 = por %p1561_p0, %p1560_p7 }
 0x2ca   : > { %p1563_p12 = pnand %p1562_p8, %p1556_p3 }
 0x2cc   : > { %1566 = shalt.err (!%p1563_p12)
}
 0x2cd   : > { %s1709_s11 = smov 128   ;;  %s1710_s27 = smov 8  }
 0x2ce   : > { %1274 = dma.vmem_to_hbm [thread:$0]  (%p2296_p13), %s2135_s12, 512, %s2132_s2, %s2139_s17, %s1709_s11, %s1709_s11, %s1710_s27  }
 0x2cf PF: > { %s2297_s5 = sld [smem:[#allocation17_spill]]  ;;  %s2298_s19 = sld [smem:[#allocation24_spill]] }
 0x2d0   : > { %p1299_p5 = scmp.ge.s32.totalorder %s1697_s10, 2 }
 0x2d5   : > { %s802_s7 = sand.u32 1, %s2297_s5   ;;  %p2299_p4 = scmp.ne.s32.totalorder %s2298_s19, 0 }
 0x2d6   : > { %s803_s13 = scalar_lea.sflag [#allocation5], %s802_s7 }
 0x2d7   : > { %p1291_p9 = pnand %p1299_p5, %p2299_p4 }
 0x2d9   : > { %1640 = dma.done.wait (!%p1291_p9), %s803_s13, 512  }
 0x2da   : > { %1642 = vsyncadd (!%p1291_p9), %s803_s13, 4294966784  ;;  %s26_s10 = sadd.s32 1, %s1697_s10   ;;  %s2301_s4 = sld [smem:[#allocation18_spill]] }
 0x2db   : > { %p2168_p6 = scmp.ge.s32.totalorder %s26_s10, 8   ;;  %s2302_s14 = smov %s2002_s21 }
 0x2dc   : > { %s2303_s2 = sld [smem:[#allocation25_spill]]  ;;  %s2304_s12 = smov %s2324_s24 }
 0x2dd   : > { %s2307_s22 = smov %s1653_s23  ;;  %s2308_s23 = smov %s1945_s3 }
 0x2de   : > { %s2309_s24 = smov %s1661_s25  ;;  %s2310_s25 = smov %s1665_s26 }
 0x2df   : > { %s2311_s26 = smov %s2302_s14  ;;  %s2312_s27 = smov %s1673_s28 }
 0x2e0   : > { %s2306_s21 = smov %s2301_s4  ;;  %s2313_s28 = smov %s1677_s29 }
 0x2e1   : > { %s2314_s29 = smov %s1948_s6  ;;  %s2315_s30 = smov %s1689_s8 }
 0x2e2   : > { %s2316_s7 = smov %s1693_s9  ;;  %s2317_s8 = smov %s2303_s2 }
 0x2e3   : > { %s2318_s9 = smov %s2304_s12  ;;  %25 = sbr.rel (!%p2168_p6) target bundleno = 20 (0x14), region = 124 }
 0x2ea   :  { %808 = vsyncpa [#allocation4], 1 }
 0x2eb   :  { %810 = vsyncpa [#allocation4 + $0x1], 1 }
 0x2ec   :  { %811 = vsyncpa [#allocation7], 1 }
 0x2ed   :  { %813 = vsyncpa [#allocation7 + $0x1], 1 }
 0x2ee   :  { %814 = vsyncpa [#allocation10], 1 }
 0x2ef   :  { %815 = vsyncpa [#allocation5], 1 }
 0x2f0   :  { %817 = vsyncpa [#allocation5 + $0x1], 1 }

</bundles_post_ra>
